<compile_context>
chip_gen: v5e
topology: v5e:2x2
jax: 0.10.0
libtpu: 0.0.40
codegen_flags: <defaults>
</compile_context>

<pallas_src>
import jax
import jax.numpy as jnp
from jax.experimental import pallas as pl
from jax.experimental.pallas import tpu as pltpu

D_IN = 10
D_HID = 20
D_OUT = 20

_LANE = 128
_SUBLANE = 8


def _round_up(x, m):
    return -(-x // m) * m


def _tpu_generation():
    try:
        kind = jax.devices()[0].device_kind.lower()
    except Exception:
        return "unknown"
    if "v5 lite" in kind or "v5e" in kind or "v5lite" in kind:
        return "v5e"
    if "v6" in kind:
        return "v6e"
    if "v7" in kind or "7x" in kind:
        return "v7x"
    return "unknown"


# Per-generation row-tile caps & scoped-VMEM ceilings:
#   v5e : 16 MiB default scope / 128 MiB phys, ~820 GB/s HBM  -> 4096 rows
#   v6e : 32 MiB default scope / 128 MiB phys, ~1.4 TB/s HBM  -> 8192 rows
#   v7x : 32 MiB default scope /  64 MiB phys, ~3.2 TB/s HBM  -> 8192 rows
_GEN_CFG = {
    "v5e": dict(row_cap=4096, vmem_ceiling=100 << 20),
    "v6e": dict(row_cap=8192, vmem_ceiling=100 << 20),
    "v7x": dict(row_cap=8192, vmem_ceiling=48 << 20),
    "unknown": dict(row_cap=4096, vmem_ceiling=48 << 20),
}


def _choose_tile(B, cap, multiple):
    """One full-extent block for small B; >=~4 large tiles for big B."""
    if B <= cap:
        return B
    steps = -(-B // cap)
    if steps >= 4:
        return cap
    tile = _round_up(-(-B // 4), multiple)
    return max(min(tile, cap), cap // 2)


def _fold_params(params):
    """Fold the three activation-free Linears into one affine map, in f32."""
    f32 = jnp.float32
    w1, b1 = params["w1"].astype(f32), params["b1"].astype(f32)
    w2, b2 = params["w2"].astype(f32), params["b2"].astype(f32)
    w3, b3 = params["w3"].astype(f32), params["b3"].astype(f32)
    w_f = (w1 @ w2) @ w3               # (10, 20)
    b_f = (b1 @ w2 + b2) @ w3 + b3     # (1, 20)
    return w_f, b_f


def _affine_kernel(x_ref, w_ref, b_ref, o_ref):
    # (TB, 10) @ (10, 20) + (1, 20) -- single MXU push, f32 accumulation.
    o_ref[...] = (
        jnp.dot(x_ref[...], w_ref[...], preferred_element_type=jnp.float32)
        + b_ref[...]
    ).astype(o_ref.dtype)


def _affine_kernel_t(xt_ref, wt_ref, bt_ref, o_ref):
    # (20, 10) @ (10, TB) + (20, 1) -- lane-dense (batch on lanes) variant.
    o_ref[...] = (
        jnp.dot(wt_ref[...], xt_ref[...], preferred_element_type=jnp.float32)
        + bt_ref[...]
    ).astype(o_ref.dtype)


def data_parallel_model_forward(x, params, *, batch_tile=None):
    """x: (B, 10). Returns (B, 20) = block3(block2(block1(x))).

    Row-major layout (features on lanes). Output lanes = 20 < 128 -> masked
    stores; use data_parallel_model_forward_transposed for the lane-dense path.
    """
    B, d_in = x.shape
    assert d_in == D_IN
    cfg = _GEN_CFG[_tpu_generation()]

    if batch_tile is None:
        batch_tile = _choose_tile(B, cfg["row_cap"], _SUBLANE)
    # (8, 128) rule: sublane block dim must be a multiple of 8 or full extent.
    assert batch_tile % _SUBLANE == 0 or batch_tile == B
    grid = (pl.cdiv(B, batch_tile),)   # ragged last block is handled by Pallas

    w_f, b_f = _fold_params(params)

    # Lane-padded VMEM budget: (TB,10) and (TB,20) f32 blocks each occupy
    # TB * 128 lanes * 4 B; double-buffered -> ~2 KiB/row (NOT 120 B/row raw).
    padded_block_bytes = 2 * 2 * (_LANE * 4) * batch_tile
    vmem_limit = min(cfg["vmem_ceiling"],
                     max(32 << 20, padded_block_bytes + (4 << 20)))

    itemsize = jnp.dtype(x.dtype).itemsize
    cost = pl.CostEstimate(
        flops=2 * B * D_IN * D_OUT,
        transcendentals=0,
        bytes_accessed=(B * D_IN + B * D_OUT) * itemsize
        + (D_IN * D_OUT + D_OUT) * 4,
    )

    return pl.pallas_call(
        _affine_kernel,
        out_shape=jax.ShapeDtypeStruct((B, D_OUT), x.dtype),
        grid_spec=pltpu.PrefetchScalarGridSpec(
            num_scalar_prefetch=0,
            grid=grid,
            in_specs=[
                pl.BlockSpec((batch_tile, D_IN), lambda i: (i, 0)),  # x tile
                pl.BlockSpec((D_IN, D_OUT), lambda i: (0, 0)),       # fused W
                pl.BlockSpec((1, D_OUT), lambda i: (0, 0)),          # fused b
            ],
            out_specs=pl.BlockSpec((batch_tile, D_OUT), lambda i: (i, 0)),
        ),
        compiler_params=pltpu.CompilerParams(
            dimension_semantics=("parallel",),
            vmem_limit_bytes=vmem_limit,
        ),
        cost_estimate=cost,
    )(x, w_f, b_f)


def data_parallel_model_forward_transposed(x_t, params, *, lane_tile=None):
    """Lane-dense variant: x_t (10, B) with B % 128 == 0 -> returns y^T (20, B).

    Batch lives on lanes, so stores are unmasked and contiguous; use this when
    the surrounding program can keep activations in (features, batch) layout.
    """
    d_in, B = x_t.shape
    assert d_in == D_IN
    assert B % _LANE == 0, "lane-dense path needs batch % 128 == 0"
    cfg = _GEN_CFG[_tpu_generation()]

    if lane_tile is None:
        # Padding per column is ~320 B double-buffered (vs ~2 KiB/row in the
        # row-major layout), so ~8x larger tiles fit in the same VMEM budget.
        lane_tile = _choose_tile(B, 8 * cfg["row_cap"], _LANE)
    assert lane_tile % _LANE == 0 or lane_tile == B
    grid = (pl.cdiv(B, lane_tile),)

    w_f, b_f = _fold_params(params)
    w_ft = w_f.T                      # (20, 10)
    b_ft = b_f.T                      # (20, 1)

    # Sublane padding: 10 -> 16 rows, 20 -> 24 rows, f32; double-buffered.
    padded_block_bytes = 2 * ((16 + 24) * 4) * lane_tile
    vmem_limit = min(cfg["vmem_ceiling"],
                     max(32 << 20, padded_block_bytes + (4 << 20)))

    itemsize = jnp.dtype(x_t.dtype).itemsize
    cost = pl.CostEstimate(
        flops=2 * B * D_IN * D_OUT,
        transcendentals=0,
        bytes_accessed=(B * D_IN + B * D_OUT) * itemsize
        + (D_IN * D_OUT + D_OUT) * 4,
    )

    return pl.pallas_call(
        _affine_kernel_t,
        out_shape=jax.ShapeDtypeStruct((D_OUT, B), x_t.dtype),
        grid_spec=pltpu.PrefetchScalarGridSpec(
            num_scalar_prefetch=0,
            grid=grid,
            in_specs=[
                pl.BlockSpec((D_IN, lane_tile), lambda i: (0, i)),   # x^T tile
                pl.BlockSpec((D_OUT, D_IN), lambda i: (0, 0)),       # W_f^T
                pl.BlockSpec((D_OUT, 1), lambda i: (0, 0)),          # b_f^T
            ],
            out_specs=pl.BlockSpec((D_OUT, lane_tile), lambda i: (0, i)),
        ),
        compiler_params=pltpu.CompilerParams(
            dimension_semantics=("parallel",),
            vmem_limit_bytes=vmem_limit,
        ),
        cost_estimate=cost,
    )(x_t, w_ft, b_ft)


def init_params(key):
    """Deterministic init mimicking nn.Linear's U(-1/sqrt(fan_in), 1/sqrt(fan_in))."""
    def linear(key, fan_in, fan_out):
        kw, kb = jax.random.split(key)
        bound = 1.0 / jnp.sqrt(fan_in)
        # stored as (in, out) so the math is x @ W  (== x @ W_pt.T + b in torch)
        w = jax.random.uniform(kw, (fan_in, fan_out), jnp.float32, -bound, bound)
        b = jax.random.uniform(kb, (1, fan_out), jnp.float32, -bound, bound)
        return w, b

    k1, k2, k3 = jax.random.split(key, 3)
    w1, b1 = linear(k1, D_IN, D_HID)
    w2, b2 = linear(k2, D_HID, D_HID)
    w3, b3 = linear(k3, D_HID, D_OUT)
    return {"w1": w1, "b1": b1, "w2": w2, "b2": b2, "w3": w3, "b3": b3}


if __name__ == "__main__":
    key = jax.random.PRNGKey(0)
    kp, kx, kx2 = jax.random.split(key, 3)
    params = init_params(kp)

    def ref_forward(x):
        h = x @ params["w1"] + params["b1"]
        h = h @ params["w2"] + params["b2"]
        return h @ params["w3"] + params["b3"]

    # 1) default row-major path (small demo batch).
    B = 8
    x = jax.random.normal(kx, (B, D_IN), jnp.float32)
    out = jax.block_until_ready(data_parallel_model_forward(x, params))
    ref = ref_forward(x)
    assert out.shape == (B, D_OUT)
    assert jnp.allclose(out, ref, atol=1e-4, rtol=1e-4), \
        f"row-major max abs err {jnp.max(jnp.abs(out - ref))}"

    # 2) lane-dense transposed-I/O path (batch on lanes, B % 128 == 0).
    B2 = 256
    x2 = jax.random.normal(kx2, (B2, D_IN), jnp.float32)
    out2 = jax.block_until_ready(
        data_parallel_model_forward_transposed(x2.T, params)).T
    ref2 = ref_forward(x2)
    assert out2.shape == (B2, D_OUT)
    assert jnp.allclose(out2, ref2, atol=1e-4, rtol=1e-4), \
        f"lane-dense max abs err {jnp.max(jnp.abs(out2 - ref2))}"

    print("KERNEL_OK")
</pallas_src>

<mosaic_0001>
module attributes {stable_mosaic.version = 11 : i64} {
  func.func @_affine_kernel(%arg0: i32, %arg1: memref<8x10xf32, #tpu.memory_space<vmem>>, %arg2: memref<10x20xf32, #tpu.memory_space<vmem>>, %arg3: memref<1x20xf32, #tpu.memory_space<vmem>>, %arg4: memref<8x20xf32, #tpu.memory_space<vmem>>) attributes {dimension_semantics = [#tpu.dimension_semantics<parallel>], iteration_bounds = array<i64: 1>, scalar_prefetch = 0 : i64, scratch_operands = 0 : i64, tpu.core_type = #tpu.core_type<tc>, window_params = [{transform_indices = @transform_0, window_bounds = array<i64: 8, 10>}, {pipeline_mode = #tpu.pipeline_mode<synchronous>, transform_indices = @transform_1, window_bounds = array<i64: 10, 20>}, {pipeline_mode = #tpu.pipeline_mode<synchronous>, transform_indices = @transform_2, window_bounds = array<i64: 1, 20>}, {transform_indices = @transform_3, window_bounds = array<i64: 8, 20>}]} {
    %c0 = arith.constant 0 : index
    %c0_0 = arith.constant 0 : index
    %0 = vector.load %arg1[%c0, %c0_0] : memref<8x10xf32, #tpu.memory_space<vmem>>, vector<8x10xf32>
    %c0_1 = arith.constant 0 : index
    %c0_2 = arith.constant 0 : index
    %1 = vector.load %arg2[%c0_1, %c0_2] : memref<10x20xf32, #tpu.memory_space<vmem>>, vector<10x20xf32>
    %cst = arith.constant dense<0.000000e+00> : vector<8x20xf32>
    %2 = tpu.matmul %0, %1, %cst {dimension_numbers = #tpu.dot_dimension_numbers<[1], [0], [0], [1], [0, 0, 1, 1], [], []>} : vector<8x10xf32>, vector<10x20xf32>, vector<8x20xf32> -> vector<8x20xf32>
    %c0_3 = arith.constant 0 : index
    %c0_4 = arith.constant 0 : index
    %3 = vector.load %arg3[%c0_3, %c0_4] : memref<1x20xf32, #tpu.memory_space<vmem>>, vector<1x20xf32>
    %4 = vector.broadcast %3 : vector<1x20xf32> to vector<8x20xf32>
    %5 = arith.addf %2, %4 : vector<8x20xf32>
    %c0_5 = arith.constant 0 : index
    %c0_6 = arith.constant 0 : index
    %6 = vector.load %arg4[%c0_5, %c0_6] : memref<8x20xf32, #tpu.memory_space<vmem>>, vector<8x20xf32>
    tpu.vector_store %arg4[%c0_5, %c0_6], %5 {strides = array<i32>} : memref<8x20xf32, #tpu.memory_space<vmem>>, vector<8x20xf32>,
    return
  }
  func.func @transform_0(%arg0: i32) -> (i32, i32) {
    %c0_i32 = arith.constant 0 : i32
    %c0_i32_0 = arith.constant 0 : i32
    return %arg0, %c0_i32 : i32, i32
  }
  func.func @transform_1(%arg0: i32) -> (i32, i32) {
    %c0_i32 = arith.constant 0 : i32
    %c0_i32_0 = arith.constant 0 : i32
    %c0_i32_1 = arith.constant 0 : i32
    return %c0_i32, %c0_i32_0 : i32, i32
  }
  func.func @transform_2(%arg0: i32) -> (i32, i32) {
    %c0_i32 = arith.constant 0 : i32
    %c0_i32_0 = arith.constant 0 : i32
    %c0_i32_1 = arith.constant 0 : i32
    return %c0_i32, %c0_i32_0 : i32, i32
  }
  func.func @transform_3(%arg0: i32) -> (i32, i32) {
    %c0_i32 = arith.constant 0 : i32
    %c0_i32_0 = arith.constant 0 : i32
    return %arg0, %c0_i32 : i32, i32
  }
}

</mosaic_0001>

<bundles_post_ra>
// kernel: tpu_custom_call.1
= control target key start
LH: loop header
LB: loop body
LE: loop exit
PB: predicated region body
PF: predicated region fallthrough
CT: control target
= control target key end

     0   :  { %8 = vsyncpa [#allocation3], 0  ;;  %s223_s0 = inlined_call_operand.hbm [shape: f32[8,10], index: 0, kind: input, shape index: {}]   ;;  %s224_s1 = inlined_call_operand.hbm [shape: f32[10,20], index: 1, kind: input, shape index: {}]   ;;  %s225_s2 = inlined_call_operand.vmem [shape: f32[1,20], index: 2, kind: input, shape index: {}]   ;;  %s226_s3 = inlined_call_operand.hbm [shape: f32[8,20], index: 3, kind: output, shape index: {}]  }
   0x1   :  { %9 = vsyncpa [#allocation6], 0 }
   0x2   :  { %10 = vsyncpa [#allocation4], 0  ;;  %s16_s14 = sshll.u32 %s223_s0, 4  ;;  %s186_s15 = smov [#allocation2]   ;;  %s17_s14 = int_to_ptr.hbm [resolvable:$true] %s16_s14 }
   0x3   :  { %s18_s16 = sshll.u32 %s186_s15, 4  ;;  %s26_s19 = sshll.u32 %s224_s1, 4  ;;  %s19_s16 = int_to_ptr.vmem [resolvable:$true] %s18_s16  ;;  %s27_s19 = int_to_ptr.hbm [resolvable:$true] %s26_s19 }
   0x4   :  { %21 = dma.hbm_to_vmem [thread:$0]  %s17_s14, 128, %s19_s16, [#allocation3]  }
   0x5   :  { %s187_s20 = smov [#allocation5]   ;;  %s188_s22 = smov 128  }
   0x6   :  { %s28_s21 = sshll.u32 %s187_s20, 4  ;;  %s189_s23 = smov 8   ;;  %s29_s21 = int_to_ptr.vmem [resolvable:$true] %s28_s21 }
   0x7   :  { %34 = dma.hbm_to_vmem [thread:$0]  %s27_s19, 256, %s29_s21, [#allocation6], %s188_s22, %s188_s22, %s189_s23  }
   0x8   :  { %180 = dma.done.wait [#allocation3], 128  }
   0x9   :  { %181 = vsyncadd [#allocation3], 4294967168 }
   0xa   :  { %182 = dma.done.wait [#allocation6], 256  }
   0xb   :  { %183 = vsyncadd [#allocation6], 4294967040  ;;  %vm56_vm0 = vcmask 1041408   ;;  %v47_v0 = vld [vmem:[#allocation5 + $0x8] sm:$0x3]  ;;  %v46_v1 = vld [vmem:[#allocation5] sm:$0xff] }
   0xc   :  { %100 = vmatpush.msk.msra.mxu0 %vm56_vm0, %v47_v0  ;;  %v45_v2 = vld [vmem:[#allocation2] sm:$0xff]  ;;  %vm52_vm1 = vcmask 80896   ;;  %s190_s24 = smov [#allocation7]   ;;  %s89_s28 = sshll.u32 %s226_s3, 4  ;;  %vm80_vm2 = vcmask 162816   ;;  %s90_s28 = int_to_ptr.hbm [resolvable:$true] %s89_s28 }
   0xd   :  { %v107_v3 = vld [vmem:[%s225_s2] ss:$0 sm:$0xff]  ;;  %s87_s25 = sshll.u32 %s190_s24, 4  ;;  %s88_s25 = int_to_ptr.vmem [resolvable:$true] %s87_s25 }
   0xe   :  { %75 = vmatpush.msra.mxu0 %v46_v1 }
   0xf   :  { %101 = vmatmul.msk.f32.vlgmr.msra.gmra.mxu0 %vm52_vm1, %v45_v2 }
  0x8c   :  { %v77_v4 = vpop.f32.mrf.mxu0 }
  0x8d   :  { %v78_v5 = vadd.f32 %v107_v3, %v77_v4 }
  0x8f   :  { %81 = vst.msk [vmem:[#allocation7] sm:$0xff] %vm80_vm2, %v78_v5 }
  0x90   :  { %92 = dma.vmem_to_hbm [thread:$0]  %s88_s25, 128, %s90_s28, [#allocation4]  }
  0x91   :  { %184 = dma.done.wait [#allocation4], 128  }
  0x92   :  { %185 = vsyncadd [#allocation4], 4294967168 }
  0x93   :  { %97 = vsyncpa [#allocation3], 1 }
  0x94   :  { %98 = vsyncpa [#allocation6], 1 }
  0x95   :  { %99 = vsyncpa [#allocation4], 1 }

</bundles_post_ra>
